<compile_context>
chip_gen: v7x
topology: tpu7x:2x2x1
jax: 0.10.0
libtpu: 0.0.40
codegen_flags: <defaults>
</compile_context>

<pallas_src>
import functools

import jax
import jax.numpy as jnp
from jax import lax
from jax.experimental import pallas as pl
from jax.experimental.pallas import tpu as pltpu


def _round_up(x, m):
    return (x + m - 1) // m * m


_VMEM_LIMIT = 32 * 1024 * 1024   # safe scoped-VMEM request on v5e / v6e / v7x
_BIG = 1e30                      # "never selected" distance for padded/invalid centroids
_BATCH_OFF = 8.0                 # batch-separation offset (coords normalized to [0,1])


# --------------------------------------------------------------------------
# Kernel 1: nearest centroid within the same batch (torch_cluster.nearest)
#
#   d'(c, q) = ||c'||^2 - 2 c'.q'     (||q'||^2 dropped: constant per query)
# with c' = (c_xyz, batch_c*OFF), q' = (q_xyz, batch_q*OFF); all of it is one
# (tm, 8) @ (8, tq) MXU matmul:
#   npos cols: [c_x, c_y, c_z, batch_c*OFF, ||c'||^2, 0, 0, 0]
#   post rows: [-2 q_x, -2 q_y, -2 q_z, -2 batch_q*OFF, 1, 0, 0, 0]
# --------------------------------------------------------------------------
def _nearest_kernel(npos_ref, post_ref, out_ref, mind_sc, mini_sc, *, tm, sub):
    # npos_ref: (tm, 8)  f32   centroid coords / batch offset / norm column
    # post_ref: (8, tq)  f32   query columns (see layout above)
    # out_ref:  (1, tq)  i32   nearest-centroid index (lane-dense)
    # mind_sc:  (1, tq)  f32   running min distance
    # mini_sc:  (1, tq)  i32   running argmin
    mj = pl.program_id(1)

    @pl.when(mj == 0)
    def _init():
        mind_sc[...] = jnp.full(mind_sc.shape, jnp.inf, jnp.float32)
        mini_sc[...] = jnp.zeros(mini_sc.shape, jnp.int32)

    post = post_ref[...]                                      # (8, tq)
    base = tm * mj
    # Inner sub-chunk loop keeps the live (sub, tq) distance tile inside the
    # vreg file (sub=32, tq=512 -> 16 vregs) while the grid step stays big.
    for s in range(0, tm, sub):
        d = jnp.dot(npos_ref[s:s + sub, :], post,
                    preferred_element_type=jnp.float32)       # (sub, tq)  MXU
        blk_min = jnp.min(d, axis=0, keepdims=True)           # (1, tq)
        ridx = (base + s) + lax.broadcasted_iota(jnp.int32, d.shape, 0)
        ridx = jnp.where(d <= blk_min, ridx, jnp.int32(2 ** 30))   # first-min tie break
        blk_idx = jnp.min(ridx, axis=0, keepdims=True)        # (1, tq)
        better = blk_min < mind_sc[...]                       # earlier chunk wins ties
        mini_sc[...] = jnp.where(better, blk_idx, mini_sc[...])
        mind_sc[...] = jnp.where(better, blk_min, mind_sc[...])

    @pl.when(mj == pl.num_programs(1) - 1)
    def _fin():
        out_ref[...] = mini_sc[...]


def nearest_pallas(pos, batch, new_pos, new_batch, *, tq=512, tm=256, sub=32):
    """For every point, index of the nearest centroid with the same batch id.

    Centroid rows with new_batch < 0 are treated as invalid (never selected).
    """
    n = pos.shape[0]
    m = new_pos.shape[0]

    pos32 = pos.astype(jnp.float32)
    cen32 = new_pos.astype(jnp.float32)
    # Normalize coordinates to ~[0,1] (same transform for both sides) so the
    # batch offset of 8 always dominates any geometric distance (max 3).
    lo = pos32.min(axis=0)
    scale = jnp.maximum(jnp.max(pos32.max(axis=0) - lo), 1e-12)
    q = (pos32 - lo) / scale                                   # (n, 3)
    c = (cen32 - lo) / scale                                   # (m, 3)

    valid = new_batch.astype(jnp.int32) >= 0                   # (m,)
    cb = jnp.where(valid, new_batch.astype(jnp.float32), 0.0) * _BATCH_OFF
    c = jnp.where(valid[:, None], c, 0.0)
    qb = batch.astype(jnp.float32) * _BATCH_OFF                # (n,)

    n_pad = _round_up(n, tq)
    tm_eff = min(tm, _round_up(m, sub))                        # multiple of sub (and 8)
    m_pad = _round_up(m, tm_eff)

    # Query matrix: rows 0..2 = -2*xyz, row 3 = -2*batch_off, row 4 = 1.0.
    post = jnp.zeros((8, n_pad), jnp.float32)
    post = post.at[:3, :n].set(-2.0 * q.T)
    post = post.at[3, :n].set(-2.0 * qb)
    post = post.at[4, :n].set(1.0)

    # Centroid matrix: cols 0..2 = xyz, col 3 = batch_off, col 4 = ||c'||^2.
    cn = jnp.sum(c * c, axis=1) + cb * cb
    cn = jnp.where(valid, cn, jnp.float32(_BIG))
    npos = jnp.zeros((m_pad, 8), jnp.float32)
    npos = npos.at[:m, :3].set(c)
    npos = npos.at[:m, 3].set(cb)
    npos = npos.at[:, 4].set(
        jnp.full((m_pad,), _BIG, jnp.float32).at[:m].set(cn))

    out = pl.pallas_call(
        functools.partial(_nearest_kernel, tm=tm_eff, sub=sub),
        out_shape=jax.ShapeDtypeStruct((1, n_pad), jnp.int32),
        grid_spec=pltpu.PrefetchScalarGridSpec(
            num_scalar_prefetch=0,
            grid=(n_pad // tq, m_pad // tm_eff),
            in_specs=[
                pl.BlockSpec((tm_eff, 8), lambda i, j: (j, 0)),
                pl.BlockSpec((8, tq), lambda i, j: (0, i)),
            ],
            out_specs=pl.BlockSpec((1, tq), lambda i, j: (0, i)),
            scratch_shapes=[pltpu.VMEM((1, tq), jnp.float32),
                            pltpu.VMEM((1, tq), jnp.int32)]),
        compiler_params=pltpu.CompilerParams(
            dimension_semantics=("parallel", "arbitrary"),
            vmem_limit_bytes=_VMEM_LIMIT),
    )(npos, post)
    return out[0, :n]


# --------------------------------------------------------------------------
# Kernel 2a: segment mean — MXU one-hot matmul, counts folded into the matmul
# --------------------------------------------------------------------------
def _seg_mean_kernel(cl_ref, x_ref, out_ref, *, sub, cnt_col):
    # cl_ref:  (1, tn)         i32  cluster id per point (padding = -1)
    # x_ref:   (tn, f_pad)     f32  (column `cnt_col` holds 1.0 for real points)
    # out_ref: (c_res, f_pad)  f32  resident sum accumulator -> mean on last step
    nj = pl.program_id(1)
    c_res = out_ref.shape[0]

    @pl.when(nj == 0)
    def _init():
        out_ref[...] = jnp.zeros_like(out_ref)

    cl = cl_ref[...]                                          # (1, tn)
    x = x_ref[...]                                            # (tn, f_pad)
    tn = cl.shape[1]
    c_base = pl.program_id(0) * c_res

    def subblock(si, carry):
        s0 = pl.multiple_of(si * sub, 8)
        cids = (c_base + si * sub) + lax.broadcasted_iota(jnp.int32, (sub, tn), 0)
        maskf = (cids == cl).astype(jnp.float32)              # (sub, tn)
        acc = out_ref[pl.ds(s0, sub), :]
        out_ref[pl.ds(s0, sub), :] = acc + jnp.dot(
            maskf, x, preferred_element_type=jnp.float32)     # MXU (counts included)
        return carry

    n_sub = c_res // sub
    lax.fori_loop(0, n_sub, subblock, 0, unroll=(n_sub <= 8))

    @pl.when(nj == pl.num_programs(1) - 1)
    def _fin():
        cnt = jnp.maximum(out_ref[:, cnt_col:cnt_col + 1], 1.0)   # (c_res, 1)
        out_ref[...] = out_ref[...] / cnt


# --------------------------------------------------------------------------
# Kernel 2b: segment max — grouped (8, F_pad) accumulation, one store per group
# --------------------------------------------------------------------------
def _seg_max_kernel(cl_ref, x_ref, out_ref):
    # cl_ref:  (tn, 1)         i32  cluster id per point (padding = -1)
    # x_ref:   (tn, f_pad)     f32
    # out_ref: (c_res, f_pad)  f32  resident running max
    nj = pl.program_id(1)
    c_res = out_ref.shape[0]

    @pl.when(nj == 0)
    def _init():
        out_ref[...] = jnp.full(out_ref.shape, -jnp.inf, out_ref.dtype)

    cl = cl_ref[...]                                          # (tn, 1)
    x = x_ref[...]                                            # (tn, f_pad)
    neg = jnp.float32(-jnp.inf)
    c_base = pl.program_id(0) * c_res

    def group(gi, carry):
        g0 = pl.multiple_of(gi * 8, 8)
        cg = c_base + gi * 8
        rows = []
        for r in range(8):                                    # static 8-row group
            m = cl == (cg + r)                                # (tn, 1)
            rows.append(jnp.max(jnp.where(m, x, neg), axis=0, keepdims=True))
        blk = jnp.concatenate(rows, axis=0)                   # (8, f_pad)
        cur = out_ref[pl.ds(g0, 8), :]
        out_ref[pl.ds(g0, 8), :] = jnp.maximum(cur, blk)      # one aligned store
        return carry

    n_grp = c_res // 8
    lax.fori_loop(0, n_grp, group, 0, unroll=(n_grp <= 8))


def segment_aggregate_pallas(x, cluster, num_segments, aggr, *, tn=1024,
                             acc_bytes=8 * 1024 * 1024):
    """aggr in {'mean', 'max'}; returns (num_segments, F) f32.

    Cluster rows are kept resident in VMEM (budget `acc_bytes`), so x is
    streamed from HBM only ceil(c_pad / c_res) times (once in the common case).
    Passing a tight `num_segments` (expected cluster count) reduces work.
    """
    n, f = x.shape
    f_pad = _round_up(f + 1, 128)                   # +1 guarantees a spare count column
    tn_eff = min(tn, _round_up(n, 128))
    n_pad = _round_up(n, tn_eff)

    if aggr == 'mean':
        sub = min(256, _round_up(num_segments, 8))  # MXU M sub-tile
        row_cap = max(sub, (acc_bytes // (f_pad * 4)) // sub * sub)
    elif aggr == 'max':
        sub = 8
        row_cap = max(8, min(1024, (acc_bytes // (f_pad * 4)) // 8 * 8))
    else:
        raise RuntimeError('Invalid aggregation method in Graph Pooling Layer')

    c_res = int(min(_round_up(num_segments, sub), row_cap))   # resident cluster rows
    c_pad = _round_up(num_segments, c_res)

    x_p = jnp.zeros((n_pad, f_pad), jnp.float32).at[:n, :f].set(x.astype(jnp.float32))
    cl = cluster.astype(jnp.int32)

    if aggr == 'mean':
        x_p = x_p.at[:n, f].set(1.0)                # ones column -> counts via the matmul
        cl_in = jnp.full((1, n_pad), -1, jnp.int32).at[0, :n].set(cl)
        kernel = functools.partial(_seg_mean_kernel, sub=sub, cnt_col=f)
        cl_spec = pl.BlockSpec((1, tn_eff), lambda i, j: (0, j))
    else:
        cl_in = jnp.full((n_pad, 1), -1, jnp.int32).at[:n, 0].set(cl)
        kernel = _seg_max_kernel
        cl_spec = pl.BlockSpec((tn_eff, 1), lambda i, j: (j, 0))

    out = pl.pallas_call(
        kernel,
        out_shape=jax.ShapeDtypeStruct((c_pad, f_pad), jnp.float32),
        grid_spec=pltpu.PrefetchScalarGridSpec(
            num_scalar_prefetch=0,
            grid=(c_pad // c_res, n_pad // tn_eff),
            in_specs=[cl_spec,
                      pl.BlockSpec((tn_eff, f_pad), lambda i, j: (j, 0))],
            out_specs=pl.BlockSpec((c_res, f_pad), lambda i, j: (i, 0))),
        compiler_params=pltpu.CompilerParams(
            dimension_semantics=("parallel", "arbitrary"),
            vmem_limit_bytes=_VMEM_LIMIT),
    )(cl_in, x_p)
    return out[:num_segments, :f]


# --------------------------------------------------------------------------
# NVPooling forward (jit-able glue + Pallas kernels)
# --------------------------------------------------------------------------
@functools.partial(jax.jit, static_argnames=('aggr', 'max_clusters'))
def _nv_pooling_core(x, pos, batch, pool_rad, aggr, max_clusters):
    red = 'max' if aggr == 'max' else 'mean'
    n = pos.shape[0]
    pos = pos.astype(jnp.float32)
    batch = batch.astype(jnp.int32)
    x = x.astype(jnp.float32)

    # ---- voxel_grid(pos, batch, pool_rad, start=min-0.5r, ...) ----
    start = pos.min(axis=0) - pool_rad * 0.5
    cell = jnp.floor((pos - start) / pool_rad).astype(jnp.int32)    # (N, 3)
    k = cell.max(axis=0) + 1
    # TODO(synk): int32 voxel key may overflow for extremely fine grids / huge batches.
    vox = (cell[:, 0]
           + cell[:, 1] * k[0]
           + cell[:, 2] * k[0] * k[1]
           + batch * k[0] * k[1] * k[2])

    # ---- consecutive_cluster #1 (static-size unique keeps this under jit) ----
    _, cluster1 = jnp.unique(vox, return_inverse=True, size=n, fill_value=0)
    cluster1 = cluster1.reshape(-1).astype(jnp.int32)

    # new_pos = scatter(pos, cluster, reduce='mean')        (Pallas, MXU)
    new_pos = segment_aggregate_pallas(pos, cluster1, max_clusters, 'mean')
    # new_batch = batch[perm] (all members of a voxel share a batch id);
    # empty clusters get INT32_MIN and are treated as invalid centroids below.
    new_batch = jax.ops.segment_max(batch, cluster1, num_segments=max_clusters)

    # ---- cluster = nearest(pos, new_pos, batch, new_batch)  (Pallas) ----
    assign = nearest_pallas(pos, batch, new_pos, new_batch)

    # ---- consecutive_cluster #2 ----
    _, cluster2 = jnp.unique(assign, return_inverse=True, size=n, fill_value=0)
    cluster2 = cluster2.reshape(-1).astype(jnp.int32)

    # data.x   = scatter(x,   cluster, reduce=aggr)          (Pallas)
    out_x = segment_aggregate_pallas(x, cluster2, max_clusters, red)
    # data.pos = scatter(pos, cluster, reduce='mean')        (Pallas)
    out_pos = segment_aggregate_pallas(pos, cluster2, max_clusters, 'mean')
    # data.batch = batch[perm]
    out_batch = jax.ops.segment_max(batch, cluster2, num_segments=max_clusters)

    count = jnp.max(cluster2) + 1
    # data.edge_index = None ; data.edge_attr = None
    return out_x, out_pos, out_batch, count


def nv_pooling_forward(x, pos, batch, pool_rad, aggr='max', max_clusters=None):
    aggr = aggr.strip().lower()
    if aggr not in ('max', 'avg'):
        raise RuntimeError('Invalid aggregation method in Graph Pooling Layer')
    if max_clusters is None:
        max_clusters = int(pos.shape[0])   # always-safe static upper bound
        # NOTE: passing a tight max_clusters (expected cluster count) makes the
        # segment kernels cheaper; it must still upper-bound the true count.
    out_x, out_pos, out_batch, count = _nv_pooling_core(
        x, pos, batch, pool_rad, aggr, max_clusters)
    c = int(count)    # single device->host sync: true (dynamic) cluster count
    return out_x[:c], out_pos[:c], out_batch[:c]


if __name__ == "__main__":
    key = jax.random.PRNGKey(0)
    k_pos0, k_pos1, k_feat = jax.random.split(key, 3)

    n_per, feat_dim = 32, 16
    pos = jnp.concatenate(
        [jax.random.uniform(k_pos0, (n_per, 3)),
         jax.random.uniform(k_pos1, (n_per, 3))], axis=0)             # (64, 3)
    x = jax.random.normal(k_feat, (2 * n_per, feat_dim))               # (64, 16)
    batch = jnp.concatenate(
        [jnp.zeros((n_per,), jnp.int32), jnp.ones((n_per,), jnp.int32)])
    pool_rad = 0.3
    n_tot = 2 * n_per

    # ---- unit check 1: segment mean / max kernels vs XLA segment ops ----
    nseg = 8
    cl_test = jax.random.randint(jax.random.PRNGKey(1), (n_tot,), 0, nseg)
    ones = jnp.ones((n_tot, 1), jnp.float32)
    cnt = jnp.maximum(jax.ops.segment_sum(ones, cl_test, num_segments=nseg), 1.0)
    ref_mean = jax.ops.segment_sum(x, cl_test, num_segments=nseg) / cnt
    got_mean = segment_aggregate_pallas(x, cl_test, nseg, 'mean')
    assert jnp.allclose(got_mean, ref_mean, atol=1e-5, rtol=1e-5)
    ref_max = jax.ops.segment_max(x, cl_test, num_segments=nseg)
    got_max = segment_aggregate_pallas(x, cl_test, nseg, 'max')
    assert jnp.allclose(got_max, ref_max, atol=1e-5, rtol=1e-5)

    # ---- unit check 2: nearest kernel vs exact batched distances ----
    mcent = 10
    cpos = jax.random.uniform(jax.random.PRNGKey(2), (mcent, 3))
    cbatch = jnp.concatenate([jnp.zeros((5,), jnp.int32), jnp.ones((5,), jnp.int32)])
    got_idx = nearest_pallas(pos, batch, cpos, cbatch)
    d_exact = jnp.sum((pos[:, None, :] - cpos[None, :, :]) ** 2, axis=-1)
    d_exact = jnp.where(batch[:, None] == cbatch[None, :], d_exact, jnp.inf)
    d_best = jnp.min(d_exact, axis=1)
    d_got = jnp.take_along_axis(d_exact, got_idx[:, None], axis=1)[:, 0]
    assert bool(jnp.all(d_got <= d_best + 1e-5))
    assert bool(jnp.all(cbatch[got_idx] == batch))

    # ---- full forward, aggr='max' ----
    new_x, new_pos, new_batch = nv_pooling_forward(x, pos, batch, pool_rad, aggr='max')
    jax.block_until_ready((new_x, new_pos, new_batch))

    # ---- full forward, aggr='avg' ----
    new_x_avg, new_pos_avg, _ = nv_pooling_forward(x, pos, batch, pool_rad, aggr='avg')
    jax.block_until_ready(new_x_avg)

    assert new_x.shape[1] == feat_dim and new_pos.shape[1] == 3
    assert new_x.shape[0] == new_pos.shape[0] == new_batch.shape[0]
    assert 2 <= new_x.shape[0] <= n_tot
    assert bool(jnp.all(jnp.isfinite(new_x)))
    assert bool(jnp.all(jnp.isfinite(new_x_avg)))
    assert bool(jnp.all((new_batch >= 0) & (new_batch <= 1)))
    print("KERNEL_OK")
</pallas_src>

<mosaic_0001>
module attributes {stable_mosaic.version = 11 : i64} {
  func.func @_seg_mean_kernel(%arg0: i32, %arg1: i32, %arg2: memref<1x128xi32, #tpu.memory_space<vmem>>, %arg3: memref<128x128xf32, #tpu.memory_space<vmem>>, %arg4: memref<8x128xf32, #tpu.memory_space<vmem>>) attributes {dimension_semantics = [#tpu.dimension_semantics<parallel>, #tpu.dimension_semantics<arbitrary>], iteration_bounds = array<i64: 1, 1>, scalar_prefetch = 0 : i64, scratch_operands = 0 : i64, tpu.core_type = #tpu.core_type<tc>, window_params = [{transform_indices = @transform_0, window_bounds = array<i64: 1, 128>}, {transform_indices = @transform_1, window_bounds = array<i64: 128, 128>}, {transform_indices = @transform_2, window_bounds = array<i64: 8, 128>}]} {
    %c0_i32 = arith.constant 0 : i32
    %0 = arith.cmpi eq, %arg1, %c0_i32 : i32
    %1 = arith.extui %0 : i1 to i32
    %c0_i32_0 = arith.constant 0 : i32
    %2 = arith.cmpi ne, %1, %c0_i32_0 : i32
    scf.if %2 {
      %cst_11 = arith.constant 0.000000e+00 : f32
      %26 = vector.broadcast %cst_11 : f32 to vector<8x128xf32>
      %c0_12 = arith.constant 0 : index
      %c0_13 = arith.constant 0 : index
      %27 = vector.load %arg4[%c0_12, %c0_13] : memref<8x128xf32, #tpu.memory_space<vmem>>, vector<8x128xf32>
      tpu.vector_store %arg4[%c0_12, %c0_13], %26 {strides = array<i32>} : memref<8x128xf32, #tpu.memory_space<vmem>>, vector<8x128xf32>,
    } else {
    }
    %c0 = arith.constant 0 : index
    %c0_1 = arith.constant 0 : index
    %3 = vector.load %arg2[%c0, %c0_1] : memref<1x128xi32, #tpu.memory_space<vmem>>, vector<1x128xi32>
    %c0_2 = arith.constant 0 : index
    %c0_3 = arith.constant 0 : index
    %4 = vector.load %arg3[%c0_2, %c0_3] : memref<128x128xf32, #tpu.memory_space<vmem>>, vector<128x128xf32>
    %c8_i32 = arith.constant 8 : i32
    %5 = arith.muli %arg0, %c8_i32 : i32
    %c0_i32_4 = arith.constant 0 : i32
    %c8_i32_5 = arith.constant 8 : i32
    %6 = arith.muli %c0_i32_4, %c8_i32_5 : i32
    %7 = tpu.assume_multiple %6, 8 : i32
    %c8_i32_6 = arith.constant 8 : i32
    %8 = arith.muli %c0_i32_4, %c8_i32_6 : i32
    %9 = arith.addi %5, %8 : i32
    %10 = tpu.iota {dimensions = array<i32: 0>} : vector<8x128xi32>
    %11 = vector.broadcast %9 : i32 to vector<8x128xi32>
    %12 = arith.addi %11, %10 : vector<8x128xi32>
    %13 = vector.broadcast %3 : vector<1x128xi32> to vector<8x128xi32>
    %14 = arith.cmpi eq, %12, %13 : vector<8x128xi32>
    %15 = arith.extui %14 : vector<8x128xi1> to vector<8x128xi32>
    %16 = arith.sitofp %15 : vector<8x128xi32> to vector<8x128xf32>
    %17 = arith.index_cast %7 : i32 to index
    %c0_7 = arith.constant 0 : index
    %18 = vector.load %arg4[%17, %c0_7] : memref<8x128xf32, #tpu.memory_space<vmem>>, vector<8x128xf32>
    %cst = arith.constant dense<0.000000e+00> : vector<8x128xf32>
    %19 = tpu.matmul %16, %4, %cst {dimension_numbers = #tpu.dot_dimension_numbers<[1], [0], [0], [1], [0, 0, 1, 1], [], []>} : vector<8x128xf32>, vector<128x128xf32>, vector<8x128xf32> -> vector<8x128xf32>
    %20 = arith.addf %18, %19 : vector<8x128xf32>
    %21 = arith.index_cast %7 : i32 to index
    %c0_8 = arith.constant 0 : index
    %22 = vector.load %arg4[%21, %c0_8] : memref<8x128xf32, #tpu.memory_space<vmem>>, vector<8x128xf32>
    tpu.vector_store %arg4[%21, %c0_8], %20 {strides = array<i32>} : memref<8x128xf32, #tpu.memory_space<vmem>>, vector<8x128xf32>,
    %c1_i32 = arith.constant 1 : i32
    %c0_i32_9 = arith.constant 0 : i32
    %23 = arith.cmpi eq, %arg1, %c0_i32_9 : i32
    %24 = arith.extui %23 : i1 to i32
    %c0_i32_10 = arith.constant 0 : i32
    %25 = arith.cmpi ne, %24, %c0_i32_10 : i32
    scf.if %25 {
      %c0_11 = arith.constant 0 : index
      %c16 = arith.constant 16 : index
      %26 = vector.load %arg4[%c0_11, %c16] : memref<8x128xf32, #tpu.memory_space<vmem>>, vector<8x1xf32>
      %cst_12 = arith.constant 1.000000e+00 : f32
      %27 = vector.broadcast %cst_12 : f32 to vector<8x1xf32>
      %28 = arith.maximumf %26, %27 : vector<8x1xf32>
      %c0_13 = arith.constant 0 : index
      %c0_14 = arith.constant 0 : index
      %29 = vector.load %arg4[%c0_13, %c0_14] : memref<8x128xf32, #tpu.memory_space<vmem>>, vector<8x128xf32>
      %30 = vector.broadcast %28 : vector<8x1xf32> to vector<8x128xf32>
      %31 = arith.divf %29, %30 : vector<8x128xf32>
      %c0_15 = arith.constant 0 : index
      %c0_16 = arith.constant 0 : index
      %32 = vector.load %arg4[%c0_15, %c0_16] : memref<8x128xf32, #tpu.memory_space<vmem>>, vector<8x128xf32>
      tpu.vector_store %arg4[%c0_15, %c0_16], %31 {strides = array<i32>} : memref<8x128xf32, #tpu.memory_space<vmem>>, vector<8x128xf32>,
    } else {
    }
    return
  }
  func.func @transform_0(%arg0: i32, %arg1: i32) -> (i32, i32) {
    %c0_i32 = arith.constant 0 : i32
    %c0_i32_0 = arith.constant 0 : i32
    return %c0_i32, %arg1 : i32, i32
  }
  func.func @transform_1(%arg0: i32, %arg1: i32) -> (i32, i32) {
    %c0_i32 = arith.constant 0 : i32
    %c0_i32_0 = arith.constant 0 : i32
    return %arg1, %c0_i32 : i32, i32
  }
  func.func @transform_2(%arg0: i32, %arg1: i32) -> (i32, i32) {
    %c0_i32 = arith.constant 0 : i32
    %c0_i32_0 = arith.constant 0 : i32
    return %arg0, %c0_i32 : i32, i32
  }
}

</mosaic_0001>

<bundles_post_ra>
// kernel: tpu_custom_call.1
= control target key start
LH: loop header
LB: loop body
LE: loop exit
PB: predicated region body
PF: predicated region fallthrough
CT: control target
= control target key end

     0   :  { %7 = vsyncpa [#allocation3], 0  ;;  %s406_s0 = inlined_call_operand.hbm [shape: s32[1,128], index: 0, kind: input, shape index: {}]   ;;  %s407_s1 = inlined_call_operand.hbm [shape: f32[128,128], index: 1, kind: input, shape index: {}]   ;;  %s408_s2 = inlined_call_operand.hbm [shape: f32[8,128], index: 2, kind: output, shape index: {}]  }
   0x1   :  { %8 = vsyncpa [#allocation6], 0 }
   0x2   :  { %9 = vsyncpa [#allocation4], 0  ;;  %s338_s9 = smov [#allocation2]   ;;  %s339_s11 = smov [#allocation5]  }
   0x3   :  { %s16_s10 = sshll.u32 %s338_s9, 4  ;;  %s25_s12 = sshll.u32 %s339_s11, 4  ;;  %s17_s10 = int_to_ptr.vmem [resolvable:$true] %s16_s10  ;;  %s363_s12 = int_to_ptr.vmem [resolvable:$true] %s25_s12 }
   0x4   :  { %s266_s15 = scalar_lea.hbm %s406_s0, 16 }
   0x5   :  { %p267_p0 = scmp.ne.s32.totalorder %s406_s0, %s266_s15  ;;  %p270_p1 = scmp.lt.u32.totalorder %s266_s15, %s406_s0 }
   0x7   :  { %p272_p2 = pnand %p270_p1, %p267_p0 }
   0x9   :  { %275 = shalt.err (!%p272_p2)
}
   0xa   :  { %s276_s20 = scalar_lea.vmem %s17_s10, 16  ;;  %s280_s21 = scalar_lea.vmem %s17_s10, 32 }
   0xb   :  { %p277_p3 = scmp.ne.s32.totalorder %s17_s10, %s276_s20  ;;  %p281_p4 = scmp.lt.s32.totalorder %s17_s10, %s17_s10 }
   0xc   :  { %p282_p5 = scmp.lt.s32.totalorder %s280_s21, %s276_s20 }
   0xe   :  { %p283_p6 = por %p282_p5, %p281_p4 }
  0x10   :  { %p284_p7 = pnand %p283_p6, %p277_p3 }
  0x12   :  { %287 = shalt.err (!%p284_p7)
}
  0x13   :  { %19 = dma.hbm_to_vmem [thread:$0]  %s406_s0, 16, %s17_s10, [#allocation3]  }
  0x14   :  { %s288_s26 = scalar_lea.hbm %s407_s1, 2048 }
  0x15   :  { %p289_p8 = scmp.ne.s32.totalorder %s407_s1, %s288_s26  ;;  %p292_p9 = scmp.lt.u32.totalorder %s288_s26, %s407_s1 }
  0x17   :  { %p294_p10 = pnand %p292_p9, %p289_p8 }
  0x19   :  { %297 = shalt.err (!%p294_p10)
}
  0x1a   :  { %s298_s3 = scalar_lea.vmem %s363_s12, 2048  ;;  %p303_p12 = scmp.lt.s32.totalorder %s363_s12, %s363_s12 }
  0x1b   :  { %p299_p11 = scmp.ne.s32.totalorder %s363_s12, %s298_s3  ;;  %p304_p13 = scmp.lt.s32.totalorder %s298_s3, %s298_s3 }
  0x1d   :  { %p305_p0 = por %p304_p13, %p303_p12 }
  0x1f   :  { %p306_p1 = pnand %p305_p0, %p299_p11 }
  0x21   :  { %309 = shalt.err (!%p306_p1)
}
  0x22   :  { %s340_s0 = smov 128   ;;  %s341_s4 = smov 8  }
  0x23   :  { %31 = dma.hbm_to_vmem [thread:$0]  %s407_s1, 2048, %s363_s12, [#allocation6], %s340_s0, %s340_s0, %s341_s4  }
  0x24   :  { %332 = dma.done.wait [#allocation3], 16  }
  0x25   :  { %333 = vsyncadd [#allocation3], 4294967280 }
  0x26   :  { %334 = dma.done.wait [#allocation6], 2048  }
  0x27   :  { %335 = vsyncadd [#allocation6], 4294965248  ;;  %v342_v0 = vmov 0.0|0.0   ;;  %vm343_vm0 = vmmov 0   ;;  %v344_v1 = vmov 0.0   ;;  %v44_v2 = vld [vmem:[#allocation5] sm:$0xff]  ;;  %v61_v23 = vlaneseq }
  0x28   :  { %229 = vmatprep.subr.bf16.mxu0 %v342_v0  ;;  %226 = vmatprep.mubr.msk.f32.mxu0 %vm343_vm0, %v344_v1  ;;  %v45_v3 = vld [vmem:[#allocation5 + $0x8] sm:$0xff]  ;;  %v46_v4 = vld [vmem:[#allocation5 + $0x10] sm:$0xff]  ;;  %v47_v6 = vld [vmem:[#allocation5 + $0x18] sm:$0xff]  ;;  %v345_v29 = vmov 1.0   ;;  %v346_v30 = vmov 16   ;;  %s347_s1 = smov [#allocation7]  }
  0x29   :  { %v230_v5 = vpack.c.bf16 %v45_v3, %v44_v2  ;;  %v233_v7 = vpack.c.bf16 %v47_v6, %v46_v4  ;;  %v48_v8 = vld [vmem:[#allocation5 + $0x20] sm:$0xff]  ;;  %v49_v9 = vld [vmem:[#allocation5 + $0x28] sm:$0xff]  ;;  %v50_v11 = vld [vmem:[#allocation5 + $0x30] sm:$0xff]  ;;  %v62_v27 = vshrl.u32 %v61_v23, 7  ;;  %263 = vset.pattern.permute.xlu0 %v346_v30  ;;  %s164_s7 = sshll.u32 %s347_s1, 4  ;;  %s165_s7 = int_to_ptr.vmem [resolvable:$true] %s164_s7 }
  0x2a   :  { %v236_v10 = vpack.c.bf16 %v49_v9, %v48_v8  ;;  %v51_v12 = vld [vmem:[#allocation5 + $0x38] sm:$0xff]  ;;  %v52_v14 = vld [vmem:[#allocation5 + $0x40] sm:$0xff]  ;;  %v53_v15 = vld [vmem:[#allocation5 + $0x48] sm:$0xff]  ;;  %s310_s8 = scalar_lea.vmem %s165_s7, 128  ;;  %p315_p3 = scmp.lt.s32.totalorder %s165_s7, %s165_s7 }
  0x2b   :  { %231 = vmatpush3.bf16.msra.mxu0 %v230_v5  ;;  %v239_v13 = vpack.c.bf16 %v51_v12, %v50_v11  ;;  %v242_v16 = vpack.c.bf16 %v53_v15, %v52_v14  ;;  %v54_v17 = vld [vmem:[#allocation5 + $0x50] sm:$0xff]  ;;  %v55_v18 = vld [vmem:[#allocation5 + $0x58] sm:$0xff]  ;;  %v56_v20 = vld [vmem:[#allocation5 + $0x60] sm:$0xff]  ;;  %p311_p2 = scmp.ne.s32.totalorder %s165_s7, %s310_s8  ;;  %p316_p4 = scmp.lt.s32.totalorder %s310_s8, %s310_s8 }
  0x2c   :  { %232 = vmatprep.subr.bf16.mxu0 %v342_v0  ;;  %v245_v19 = vpack.c.bf16 %v55_v18, %v54_v17  ;;  %v57_v21 = vld [vmem:[#allocation5 + $0x68] sm:$0xff]  ;;  %v58_v24 = vld [vmem:[#allocation5 + $0x70] sm:$0xff]  ;;  %v59_v25 = vld [vmem:[#allocation5 + $0x78] sm:$0xff] }
  0x2d   :  { %v248_v22 = vpack.c.bf16 %v57_v21, %v56_v20  ;;  %v251_v26 = vpack.c.bf16 %v59_v25, %v58_v24  ;;  %v174_v28 = vld [vmem:[#allocation2] ss:$0 sm:$0xff]  ;;  %p317_p5 = por %p316_p4, %p315_p3 }
  0x2e   :  { %vm69_vm1 = vcmp.eq.s32.totalorder %v62_v27, %v174_v28 }
  0x2f   :  { %234 = vmatpush3.bf16.msra.mxu0 %v233_v7  ;;  %p318_p6 = pnand %p317_p5, %p311_p2 }
  0x30   :  { %235 = vmatprep.subr.bf16.mxu0 %v342_v0 }
  0x33   :  { %237 = vmatpush3.bf16.msra.mxu0 %v236_v10 }
  0x34   :  { %238 = vmatprep.subr.bf16.mxu0 %v342_v0 }
  0x37   :  { %240 = vmatpush3.bf16.msra.mxu0 %v239_v13 }
  0x38   :  { %241 = vmatprep.subr.bf16.mxu0 %v342_v0 }
  0x3b   :  { %243 = vmatpush3.bf16.msra.mxu0 %v242_v16 }
  0x3c   :  { %244 = vmatprep.subr.bf16.mxu0 %v342_v0 }
  0x3f   :  { %246 = vmatpush3.bf16.msra.mxu0 %v245_v19 }
  0x40   :  { %247 = vmatprep.subr.bf16.mxu0 %v342_v0 }
  0x43   :  { %249 = vmatpush3.bf16.msra.mxu0 %v248_v22 }
  0x44   :  { %250 = vmatprep.subr.bf16.mxu0 %v342_v0 }
  0x47   :  { %252 = vmatpush3.bf16.msra.mxu0 %v251_v26 }
  0x4a   :  { %227 = vmatmul.mubr.msk.f32.vlgmr.msra.gmra.mrb[0].mxu0 %vm69_vm1, %v345_v29 }
 0x11d   :  { %v139_v31 = vpop.f32.mrb[0].mxu0 }
 0x11e   :  { %v228_v32 = vpop.f32.mrb[1].mxu0  ;;  %v149_v33 = vmax.f32 %v139_v31, 1.0 }
 0x120   :  { %152 = vperm.xlu0 %263, %v149_v33  }
 0x19f   :  { %v153_v34 = vpop.permute.xlu0 %152 }
 0x1a0   :  { %264 = vrcp.f32 %v153_v34 }
 0x1aa   :  { %v265_v35 = vpop.eup %264 }
 0x1ab   :  { %v156_v36 = vmul.f32 %v265_v35, %v139_v31 }
 0x1ad   :  { %157 = vst [vmem:[#allocation7] sm:$0xff] %v156_v36 }
 0x1ae   :  { %321 = shalt.err (!%p318_p6)
}
 0x1af   :  { %s322_s11 = scalar_lea.hbm %s408_s2, 128 }
 0x1b0   :  { %p323_p7 = scmp.ne.s32.totalorder %s408_s2, %s322_s11  ;;  %p326_p8 = scmp.lt.u32.totalorder %s322_s11, %s408_s2 }
 0x1b2   :  { %p328_p9 = pnand %p326_p8, %p323_p7 }
 0x1b4   :  { %331 = shalt.err (!%p328_p9)
}
 0x1b5   :  { %167 = dma.vmem_to_hbm [thread:$0]  %s165_s7, 128, %s408_s2, [#allocation4]  }
 0x1b6   :  { %336 = dma.done.wait [#allocation4], 128  }
 0x1b7   :  { %337 = vsyncadd [#allocation4], 4294967168 }
 0x1b8   :  { %171 = vsyncpa [#allocation3], 1 }
 0x1b9   :  { %172 = vsyncpa [#allocation6], 1 }
 0x1ba   :  { %173 = vsyncpa [#allocation4], 1 }

</bundles_post_ra>
